<compile_context>
chip_gen: v5e
topology: v5e:2x2
jax: 0.10.0
libtpu: 0.0.40
codegen_flags: <defaults>
</compile_context>

<pallas_src>
import functools

import jax
import jax.numpy as jnp
from jax import lax
from jax.experimental import pallas as pl
from jax.experimental.pallas import tpu as pltpu

BN_EPS = 1e-5
LANES = 128


def _round_up(x, m):
    return (x + m - 1) // m * m


def conv_bn_relu_pool_kernel(p_ref, w_ref, out_ref, *, m_pad, m_true):
    """p_ref:  (4*m_pad, K)  window-major im2col patches (bf16 or f32, VMEM)
       w_ref:  (K, 128)      conv weight, Cout zero-padded to 128 lanes
       out_ref:(m_pad, 128)  pooled output rows ordered (n, ph, pw), lane-dense"""
    # Conv2d(3x3, stride 1, pad 0, bias=False): one MXU pass, f32 accumulation.
    c_all = jnp.dot(p_ref[...], w_ref[...], preferred_element_type=jnp.float32)

    n_true = 4 * m_true                 # true conv-output pixel count (N*OH*OW)
    n_pad = 4 * (m_pad - m_true)        # zero-padded rows (excluded from stats)
    inv_n = 1.0 / n_true

    # BatchNorm2d(affine=False), training mode: per-channel batch statistics.
    # Padded rows are all-zero patches -> conv output 0 -> contribute 0 to the
    # raw sum; their centered squares contribute n_pad*mean^2, subtracted below.
    mean = jnp.sum(c_all, axis=0, keepdims=True) * inv_n          # (1, 128)
    diff = c_all - mean                                           # reused below
    var = (jnp.sum(diff * diff, axis=0, keepdims=True)
           - n_pad * (mean * mean)) * inv_n
    scale = lax.rsqrt(var + BN_EPS) * 2.0   # fold z = y + y into the BN scale

    # 2x2 max-pool FIRST (max commutes with the positive-affine + ReLU chain),
    # then apply normalize/ReLU/x2 once to the pooled max. Slices are
    # sublane-aligned because m_pad % 8 == 0.
    d0 = diff[0 * m_pad:1 * m_pad]
    d1 = diff[1 * m_pad:2 * m_pad]
    d2 = diff[2 * m_pad:3 * m_pad]
    d3 = diff[3 * m_pad:4 * m_pad]
    dmax = jnp.maximum(jnp.maximum(d0, d1), jnp.maximum(d2, d3))
    out_ref[...] = jnp.maximum(dmax * scale, 0.0)


def _make_window_major_patches(x_nhwc, kh=3, kw=3):
    """Layout plumbing (glue): im2col + group rows by 2x2 pool window."""
    n, h, w, cin = x_nhwc.shape
    oh, ow = h - (kh - 1), w - (kw - 1)
    assert oh % 2 == 0 and ow % 2 == 0, "spatial dims chosen so pool crops nothing"
    ph, pw = oh // 2, ow // 2
    # (N, OH, OW, KH*KW*Cin), patch order (ky, kx, cin)
    cols = jnp.stack([x_nhwc[:, ky:ky + oh, kx:kx + ow, :]
                      for ky in range(kh) for kx in range(kw)], axis=3)
    cols = cols.reshape(n, oh, ow, kh * kw * cin)
    # group by 2x2 pool window -> (4, N*PH*PW, K)
    cols = cols.reshape(n, ph, 2, pw, 2, kh * kw * cin)
    cols = cols.transpose(2, 4, 0, 1, 3, 5).reshape(4, n * ph * pw, kh * kw * cin)
    return cols, (n, ph, pw)


def test_model_forward(x_nchw, conv_w, *, compute_dtype=jnp.bfloat16):
    """x_nchw: (N, Cin, H, W); conv_w: (Cout, Cin, 3, 3).
       Returns same result as the PyTorch TestModel.forward (training-mode BN)."""
    n, cin, h, w = x_nchw.shape
    cout = conv_w.shape[0]
    assert cout <= LANES

    x_nhwc = jnp.transpose(x_nchw, (0, 2, 3, 1)).astype(compute_dtype)
    patches, (n_, ph, pw) = _make_window_major_patches(x_nhwc)
    m_true = n_ * ph * pw
    k = 3 * 3 * cin
    m_pad = _round_up(m_true, 8)

    # Zero-pad each window slice to m_pad rows (sublane alignment), then merge
    # the 4 window slices into one (4*m_pad, K) matmul operand.
    patches = jnp.pad(patches, ((0, 0), (0, m_pad - m_true), (0, 0)))
    patches_all = patches.reshape(4 * m_pad, k)

    # (Cout, Cin, KH, KW) -> (K, Cout) matching patch order (ky, kx, cin);
    # zero-pad Cout -> 128 lanes so output stores are lane-dense.
    w2d = jnp.transpose(conv_w, (2, 3, 1, 0)).reshape(k, cout)
    w2d = jnp.pad(w2d, ((0, 0), (0, LANES - cout))).astype(compute_dtype)

    kernel = functools.partial(conv_bn_relu_pool_kernel,
                               m_pad=m_pad, m_true=m_true)

    itemsize = jnp.dtype(compute_dtype).itemsize
    cost = pl.CostEstimate(
        flops=2 * (4 * m_pad) * k * LANES + 12 * (4 * m_pad) * LANES,
        transcendentals=LANES,  # one rsqrt row
        bytes_accessed=(4 * m_pad * k * itemsize          # patches
                        + k * LANES * itemsize            # weights
                        + m_pad * LANES * 4))             # f32 output

    pooled = pl.pallas_call(
        kernel,
        out_shape=jax.ShapeDtypeStruct((m_pad, LANES), jnp.float32),
        in_specs=[pl.BlockSpec(memory_space=pltpu.MemorySpace.VMEM),
                  pl.BlockSpec(memory_space=pltpu.MemorySpace.VMEM)],
        out_specs=pl.BlockSpec(memory_space=pltpu.MemorySpace.VMEM),
        cost_estimate=cost,
    )(patches_all, w2d)

    # Drop padding; pooled rows are (n, ph, pw) -> NHWC -> torch.transpose(.,0,3):
    # NCHW pooled is (N, C, PH, PW); transpose(0, 3) = (PW, C, PH, N).
    pooled = pooled[:m_true, :cout].reshape(n, ph, pw, cout)
    return jnp.transpose(pooled, (2, 3, 1, 0))


def _reference_forward(x_nchw, conv_w):
    """Pure-JAX f32 reference mirroring the PyTorch semantics."""
    y = lax.conv_general_dilated(x_nchw, conv_w, window_strides=(1, 1),
                                 padding="VALID",
                                 dimension_numbers=("NCHW", "OIHW", "NCHW"))
    mean = jnp.mean(y, axis=(0, 2, 3), keepdims=True)
    var = jnp.mean((y - mean) ** 2, axis=(0, 2, 3), keepdims=True)
    y = (y - mean) * lax.rsqrt(var + BN_EPS)
    z = jnp.maximum(y, 0.0)
    z = z + z
    z1 = lax.reduce_window(z, -jnp.inf, lax.max,
                           window_dimensions=(1, 1, 2, 2),
                           window_strides=(1, 1, 2, 2), padding="VALID")
    return jnp.transpose(z1, (3, 1, 2, 0))


if __name__ == "__main__":
    key = jax.random.PRNGKey(0)
    k_x, k_w = jax.random.split(key)

    N, CIN, H, W = 2, 4, 16, 16
    COUT = 16
    x = jax.random.normal(k_x, (N, CIN, H, W), dtype=jnp.float32)
    conv_w = 0.1 * jax.random.normal(k_w, (COUT, CIN, 3, 3), dtype=jnp.float32)

    ref = jax.block_until_ready(_reference_forward(x, conv_w))

    # f32 operand path: tight check against the f32 reference.
    out_f32 = jax.block_until_ready(
        test_model_forward(x, conv_w, compute_dtype=jnp.float32))
    assert out_f32.shape == (W // 2 - 1, COUT, H // 2 - 1, N), out_f32.shape  # (7,16,7,2)
    assert jnp.allclose(out_f32, ref, rtol=1e-3, atol=1e-3), "f32 mismatch vs reference"

    # bf16 operand path (MXU-native on v6e/v7x): looser, bf16-appropriate tolerance.
    out_bf16 = jax.block_until_ready(
        test_model_forward(x, conv_w, compute_dtype=jnp.bfloat16))
    assert out_bf16.shape == ref.shape, out_bf16.shape
    assert jnp.allclose(out_bf16, ref, rtol=5e-2, atol=5e-2), "bf16 mismatch vs reference"

    print("KERNEL_OK")
</pallas_src>

<mosaic_0001>
module attributes {stable_mosaic.version = 11 : i64} {
  func.func @conv_bn_relu_pool_kernel(%arg0: memref<416x36xf32, #tpu.memory_space<vmem>>, %arg1: memref<36x128xf32, #tpu.memory_space<vmem>>, %arg2: memref<104x128xf32, #tpu.memory_space<vmem>>) attributes {dimension_semantics = [], scalar_prefetch = 0 : i64, scratch_operands = 0 : i64, tpu.core_type = #tpu.core_type<tc>} {
    %c0 = arith.constant 0 : index
    %c0_0 = arith.constant 0 : index
    %0 = vector.load %arg0[%c0, %c0_0] : memref<416x36xf32, #tpu.memory_space<vmem>>, vector<416x36xf32>
    %c0_1 = arith.constant 0 : index
    %c0_2 = arith.constant 0 : index
    %1 = vector.load %arg1[%c0_1, %c0_2] : memref<36x128xf32, #tpu.memory_space<vmem>>, vector<36x128xf32>
    %cst = arith.constant dense<0.000000e+00> : vector<416x128xf32>
    %2 = tpu.matmul %0, %1, %cst {dimension_numbers = #tpu.dot_dimension_numbers<[1], [0], [0], [1], [0, 0, 1, 1], [], []>} : vector<416x36xf32>, vector<36x128xf32>, vector<416x128xf32> -> vector<416x128xf32>
    %cst_3 = arith.constant dense<0.000000e+00> : vector<128xf32>
    %3 = vector.multi_reduction <add>, %2, %cst_3 [0] : vector<416x128xf32> to vector<128xf32>
    %4 = vector.shape_cast %3 : vector<128xf32> to vector<1x128xf32>
    %cst_4 = arith.constant 0.00255102036 : f32
    %5 = vector.broadcast %cst_4 : f32 to vector<1x128xf32>
    %6 = arith.mulf %4, %5 : vector<1x128xf32>
    %7 = vector.broadcast %6 : vector<1x128xf32> to vector<416x128xf32>
    %8 = arith.subf %2, %7 : vector<416x128xf32>
    %9 = arith.mulf %8, %8 : vector<416x128xf32>
    %cst_5 = arith.constant dense<0.000000e+00> : vector<128xf32>
    %10 = vector.multi_reduction <add>, %9, %cst_5 [0] : vector<416x128xf32> to vector<128xf32>
    %11 = vector.shape_cast %10 : vector<128xf32> to vector<1x128xf32>
    %12 = arith.mulf %6, %6 : vector<1x128xf32>
    %cst_6 = arith.constant 2.400000e+01 : f32
    %13 = vector.broadcast %cst_6 : f32 to vector<1x128xf32>
    %14 = arith.mulf %13, %12 : vector<1x128xf32>
    %15 = arith.subf %11, %14 : vector<1x128xf32>
    %cst_7 = arith.constant 0.00255102036 : f32
    %16 = vector.broadcast %cst_7 : f32 to vector<1x128xf32>
    %17 = arith.mulf %15, %16 : vector<1x128xf32>
    %cst_8 = arith.constant 9.99999974E-6 : f32
    %18 = vector.broadcast %cst_8 : f32 to vector<1x128xf32>
    %19 = arith.addf %17, %18 : vector<1x128xf32>
    %20 = math.rsqrt %19 : vector<1x128xf32>
    %cst_9 = arith.constant 2.000000e+00 : f32
    %21 = vector.broadcast %cst_9 : f32 to vector<1x128xf32>
    %22 = arith.mulf %20, %21 : vector<1x128xf32>
    %23 = vector.extract_strided_slice %8 {offsets = [0, 0], sizes = [104, 128], strides = [1, 1]} : vector<416x128xf32> to vector<104x128xf32>
    %24 = vector.extract_strided_slice %8 {offsets = [104, 0], sizes = [104, 128], strides = [1, 1]} : vector<416x128xf32> to vector<104x128xf32>
    %25 = vector.extract_strided_slice %8 {offsets = [208, 0], sizes = [104, 128], strides = [1, 1]} : vector<416x128xf32> to vector<104x128xf32>
    %26 = vector.extract_strided_slice %8 {offsets = [312, 0], sizes = [104, 128], strides = [1, 1]} : vector<416x128xf32> to vector<104x128xf32>
    %27 = arith.maximumf %23, %24 : vector<104x128xf32>
    %28 = arith.maximumf %25, %26 : vector<104x128xf32>
    %29 = arith.maximumf %27, %28 : vector<104x128xf32>
    %30 = vector.broadcast %22 : vector<1x128xf32> to vector<104x128xf32>
    %31 = arith.mulf %29, %30 : vector<104x128xf32>
    %cst_10 = arith.constant 0.000000e+00 : f32
    %32 = vector.broadcast %cst_10 : f32 to vector<104x128xf32>
    %33 = arith.maximumf %31, %32 : vector<104x128xf32>
    %c0_11 = arith.constant 0 : index
    %c0_12 = arith.constant 0 : index
    %34 = vector.load %arg2[%c0_11, %c0_12] : memref<104x128xf32, #tpu.memory_space<vmem>>, vector<104x128xf32>
    tpu.vector_store %arg2[%c0_11, %c0_12], %33 {strides = array<i32>} : memref<104x128xf32, #tpu.memory_space<vmem>>, vector<104x128xf32>,
    return
  }
}

</mosaic_0001>

<bundles_post_ra>
// kernel: tpu_custom_call.1
= control target key start
LH: loop header
LB: loop body
LE: loop exit
PB: predicated region body
PF: predicated region fallthrough
CT: control target
= control target key end

     0   :  { %vm226_vm0 = vcmask 1043456   ;;  %s1628_s0 = inlined_call_operand.vmem [shape: f32[416,36], index: 0, kind: input, shape index: {}]   ;;  %s1629_s1 = inlined_call_operand.vmem [shape: f32[36,128], index: 1, kind: input, shape index: {}]   ;;  %s1630_s2 = inlined_call_operand.hbm [shape: f32[104,128], index: 2, kind: output, shape index: {}]  }
   0x1   :  { %v68_v0 = vld [vmem:[%s1629_s1 + $0x20] sm:$0xf]  ;;  %v67_v1 = vld [vmem:[%s1629_s1 + $0x18] sm:$0xff]  ;;  %v66_v2 = vld [vmem:[%s1629_s1 + $0x10] sm:$0xff] }
   0x2   :  { %734 = vmatpush.msk.msra.mxu0 %vm226_vm0, %v68_v0  ;;  %787 = vmatpush.msk.msra.mxu1 %vm226_vm0, %v68_v0 }
   0x3   :  { %788 = vmatpush.msk.msra.mxu2 %vm226_vm0, %v68_v0  ;;  %789 = vmatpush.msk.msra.mxu3 %vm226_vm0, %v68_v0 }
   0x4   :  { %242 = vmatpush.msra.mxu0 %v67_v1  ;;  %790 = vmatpush.msra.mxu1 %v67_v1 }
   0x5   :  { %7 = vsyncpa [#allocation3], 0  ;;  %v65_v3 = vld [vmem:[%s1629_s1 + $0x8] sm:$0xff]  ;;  %791 = vmatpush.msra.mxu2 %v67_v1  ;;  %792 = vmatpush.msra.mxu3 %v67_v1  ;;  %v64_v4 = vld [vmem:[%s1629_s1] sm:$0xff]  ;;  %vm69_vm1 = vcmask 293888   ;;  %s722_s10 = sshll.u32 %s1630_s2, 4  ;;  %s723_s10 = int_to_ptr.hbm [resolvable:$true] %s722_s10 }
   0x6   :  { %243 = vmatpush.msra.mxu0 %v66_v2  ;;  %793 = vmatpush.msra.mxu1 %v66_v2  ;;  %v12_v5 = vld [vmem:[%s1628_s0] sm:$0xff]  ;;  %v25_v6 = vld [vmem:[%s1628_s0 + $0x68] sm:$0xff]  ;;  %v26_v8 = vld [vmem:[%s1628_s0 + $0x70] sm:$0xff]  ;;  %s834_s11 = smov 128   ;;  %s835_s12 = smov 8  }
   0x7   :  { %794 = vmatpush.msra.mxu2 %v66_v2  ;;  %795 = vmatpush.msra.mxu3 %v66_v2  ;;  %v13_v7 = vld [vmem:[%s1628_s0 + $0x8] sm:$0xff]  ;;  %v38_v9 = vld [vmem:[%s1628_s0 + $0xd0] sm:$0xff]  ;;  %v27_v11 = vld [vmem:[%s1628_s0 + $0x78] sm:$0xff] }
   0x8   :  { %244 = vmatpush.msra.mxu0 %v65_v3  ;;  %796 = vmatpush.msra.mxu1 %v65_v3  ;;  %v14_v10 = vld [vmem:[%s1628_s0 + $0x10] sm:$0xff]  ;;  %v39_v12 = vld [vmem:[%s1628_s0 + $0xd8] sm:$0xff]  ;;  %v28_v14 = vld [vmem:[%s1628_s0 + $0x80] sm:$0xff] }
   0x9   :  { %797 = vmatpush.msra.mxu2 %v65_v3  ;;  %798 = vmatpush.msra.mxu3 %v65_v3  ;;  %v15_v13 = vld [vmem:[%s1628_s0 + $0x18] sm:$0xff]  ;;  %v40_v15 = vld [vmem:[%s1628_s0 + $0xe0] sm:$0xff]  ;;  %v29_v17 = vld [vmem:[%s1628_s0 + $0x88] sm:$0xff] }
   0xa   :  { %245 = vmatpush.msra.mxu0 %v64_v4  ;;  %799 = vmatpush.msra.mxu1 %v64_v4  ;;  %v16_v16 = vld [vmem:[%s1628_s0 + $0x20] sm:$0xff]  ;;  %v41_v18 = vld [vmem:[%s1628_s0 + $0xe8] sm:$0xff]  ;;  %v30_v20 = vld [vmem:[%s1628_s0 + $0x90] sm:$0xff] }
   0xb   :  { %735 = vmatmul.msk.f32.vlgmr.msra.gmra.mxu0 %vm69_vm1, %v12_v5  ;;  %748 = vmatmul.msk.f32.vlgmr.msra.gmra.mxu1 %vm69_vm1, %v25_v6  ;;  %v17_v19 = vld [vmem:[%s1628_s0 + $0x28] sm:$0xff]  ;;  %v51_v21 = vld [vmem:[%s1628_s0 + $0x138] sm:$0xff]  ;;  %v42_v22 = vld [vmem:[%s1628_s0 + $0xf0] sm:$0xff] }
   0xc   :  { %800 = vmatpush.msra.mxu2 %v64_v4  ;;  %801 = vmatpush.msra.mxu3 %v64_v4  ;;  %v18_v23 = vld [vmem:[%s1628_s0 + $0x30] sm:$0xff]  ;;  %v31_v24 = vld [vmem:[%s1628_s0 + $0x98] sm:$0xff]  ;;  %v52_v25 = vld [vmem:[%s1628_s0 + $0x140] sm:$0xff] }
   0xd   :  { %761 = vmatmul.msk.f32.vlgmr.msra.gmra.mxu2 %vm69_vm1, %v38_v9  ;;  %774 = vmatmul.msk.f32.vlgmr.msra.gmra.mxu3 %vm69_vm1, %v51_v21  ;;  %v43_v26 = vld [vmem:[%s1628_s0 + $0xf8] sm:$0xff]  ;;  %v32_v28 = vld [vmem:[%s1628_s0 + $0xa0] sm:$0xff]  ;;  %v53_v29 = vld [vmem:[%s1628_s0 + $0x148] sm:$0xff] }
   0xe   :  { %v19_v27 = vld [vmem:[%s1628_s0 + $0x38] sm:$0xff]  ;;  %v44_v30 = vld [vmem:[%s1628_s0 + $0x100] sm:$0xff]  ;;  %v33_v32 = vld [vmem:[%s1628_s0 + $0xa8] sm:$0xff] }
   0xf   :  { %v20_v31 = vld [vmem:[%s1628_s0 + $0x40] sm:$0xff]  ;;  %v54_v33 = vld [vmem:[%s1628_s0 + $0x150] sm:$0xff]  ;;  %v45_v34 = vld [vmem:[%s1628_s0 + $0x108] sm:$0xff] }
  0x10   :  { %v21_v35 = vld [vmem:[%s1628_s0 + $0x48] sm:$0xff]  ;;  %v34_v36 = vld [vmem:[%s1628_s0 + $0xb0] sm:$0xff]  ;;  %v55_v37 = vld [vmem:[%s1628_s0 + $0x158] sm:$0xff] }
  0x11   :  { %v46_v38 = vld [vmem:[%s1628_s0 + $0x110] sm:$0xff]  ;;  %v35_v40 = vld [vmem:[%s1628_s0 + $0xb8] sm:$0xff]  ;;  %v56_v41 = vld [vmem:[%s1628_s0 + $0x160] sm:$0xff] }
  0x12   :  { %v22_v39 = vld [vmem:[%s1628_s0 + $0x50] sm:$0xff]  ;;  %v47_v42 = vld [vmem:[%s1628_s0 + $0x118] sm:$0xff]  ;;  %v36_v44 = vld [vmem:[%s1628_s0 + $0xc0] sm:$0xff] }
  0x13   :  { %736 = vmatmul.msk.f32.gmra.mxu0 %vm69_vm1, %v13_v7  ;;  %749 = vmatmul.msk.f32.gmra.mxu1 %vm69_vm1, %v26_v8  ;;  %v23_v43 = vld [vmem:[%s1628_s0 + $0x58] sm:$0xff]  ;;  %v57_v45 = vld [vmem:[%s1628_s0 + $0x168] sm:$0xff]  ;;  %v24_v46 = vld [vmem:[%s1628_s0 + $0x60] sm:$0xff] }
  0x14   :  { %v37_v47 = vld [vmem:[%s1628_s0 + $0xc8] sm:$0xff]  ;;  %v48_v48 = vld [vmem:[%s1628_s0 + $0x120] sm:$0xff]  ;;  %v58_v49 = vld [vmem:[%s1628_s0 + $0x170] sm:$0xff] }
  0x15   :  { %762 = vmatmul.msk.f32.gmra.mxu2 %vm69_vm1, %v39_v12  ;;  %775 = vmatmul.msk.f32.gmra.mxu3 %vm69_vm1, %v52_v25  ;;  %v49_v50 = vld [vmem:[%s1628_s0 + $0x128] sm:$0xff]  ;;  %v59_v51 = vld [vmem:[%s1628_s0 + $0x178] sm:$0xff]  ;;  %v50_v52 = vld [vmem:[%s1628_s0 + $0x130] sm:$0xff] }
  0x16   :  { %v60_v53 = vld [vmem:[%s1628_s0 + $0x180] sm:$0xff]  ;;  %v61_v54 = vld [vmem:[%s1628_s0 + $0x188] sm:$0xff]  ;;  %v62_v57 = vld [vmem:[%s1628_s0 + $0x190] sm:$0xff] }
  0x17   :  { %v63_v59 = vld [vmem:[%s1628_s0 + $0x198] sm:$0xff]  ;;  %s833_s0 = smov [#allocation2]  }
  0x18   :  { %s720_s7 = sshll.u32 %s833_s0, 4  ;;  %s721_s7 = int_to_ptr.vmem [resolvable:$true] %s720_s7 }
  0x1b   :  { %737 = vmatmul.msk.f32.gmra.mxu0 %vm69_vm1, %v14_v10  ;;  %750 = vmatmul.msk.f32.gmra.mxu1 %vm69_vm1, %v27_v11 }
  0x1d   :  { %763 = vmatmul.msk.f32.gmra.mxu2 %vm69_vm1, %v40_v15  ;;  %776 = vmatmul.msk.f32.gmra.mxu3 %vm69_vm1, %v53_v29 }
  0x23   :  { %738 = vmatmul.msk.f32.gmra.mxu0 %vm69_vm1, %v15_v13  ;;  %751 = vmatmul.msk.f32.gmra.mxu1 %vm69_vm1, %v28_v14 }
  0x25   :  { %764 = vmatmul.msk.f32.gmra.mxu2 %vm69_vm1, %v41_v18  ;;  %777 = vmatmul.msk.f32.gmra.mxu3 %vm69_vm1, %v54_v33 }
  0x2b   :  { %739 = vmatmul.msk.f32.gmra.mxu0 %vm69_vm1, %v16_v16  ;;  %752 = vmatmul.msk.f32.gmra.mxu1 %vm69_vm1, %v29_v17 }
  0x2d   :  { %765 = vmatmul.msk.f32.gmra.mxu2 %vm69_vm1, %v42_v22  ;;  %778 = vmatmul.msk.f32.gmra.mxu3 %vm69_vm1, %v55_v37 }
  0x33   :  { %740 = vmatmul.msk.f32.gmra.mxu0 %vm69_vm1, %v17_v19  ;;  %753 = vmatmul.msk.f32.gmra.mxu1 %vm69_vm1, %v30_v20 }
  0x35   :  { %766 = vmatmul.msk.f32.gmra.mxu2 %vm69_vm1, %v43_v26  ;;  %779 = vmatmul.msk.f32.gmra.mxu3 %vm69_vm1, %v56_v41 }
  0x3b   :  { %741 = vmatmul.msk.f32.gmra.mxu0 %vm69_vm1, %v18_v23  ;;  %754 = vmatmul.msk.f32.gmra.mxu1 %vm69_vm1, %v31_v24 }
  0x3d   :  { %767 = vmatmul.msk.f32.gmra.mxu2 %vm69_vm1, %v44_v30  ;;  %780 = vmatmul.msk.f32.gmra.mxu3 %vm69_vm1, %v57_v45 }
  0x43   :  { %742 = vmatmul.msk.f32.gmra.mxu0 %vm69_vm1, %v19_v27  ;;  %755 = vmatmul.msk.f32.gmra.mxu1 %vm69_vm1, %v32_v28 }
  0x45   :  { %768 = vmatmul.msk.f32.gmra.mxu2 %vm69_vm1, %v45_v34  ;;  %781 = vmatmul.msk.f32.gmra.mxu3 %vm69_vm1, %v58_v49 }
  0x4b   :  { %743 = vmatmul.msk.f32.gmra.mxu0 %vm69_vm1, %v20_v31  ;;  %756 = vmatmul.msk.f32.gmra.mxu1 %vm69_vm1, %v33_v32 }
  0x4d   :  { %769 = vmatmul.msk.f32.gmra.mxu2 %vm69_vm1, %v46_v38  ;;  %782 = vmatmul.msk.f32.gmra.mxu3 %vm69_vm1, %v59_v51 }
  0x53   :  { %744 = vmatmul.msk.f32.gmra.mxu0 %vm69_vm1, %v21_v35  ;;  %757 = vmatmul.msk.f32.gmra.mxu1 %vm69_vm1, %v34_v36 }
  0x55   :  { %770 = vmatmul.msk.f32.gmra.mxu2 %vm69_vm1, %v47_v42  ;;  %783 = vmatmul.msk.f32.gmra.mxu3 %vm69_vm1, %v60_v53 }
  0x5b   :  { %745 = vmatmul.msk.f32.gmra.mxu0 %vm69_vm1, %v22_v39  ;;  %758 = vmatmul.msk.f32.gmra.mxu1 %vm69_vm1, %v35_v40 }
  0x5d   :  { %771 = vmatmul.msk.f32.gmra.mxu2 %vm69_vm1, %v48_v48  ;;  %784 = vmatmul.msk.f32.gmra.mxu3 %vm69_vm1, %v61_v54 }
  0x63   :  { %746 = vmatmul.msk.f32.gmra.mxu0 %vm69_vm1, %v23_v43  ;;  %759 = vmatmul.msk.f32.gmra.mxu1 %vm69_vm1, %v36_v44 }
  0x65   :  { %772 = vmatmul.msk.f32.gmra.mxu2 %vm69_vm1, %v49_v50  ;;  %785 = vmatmul.msk.f32.gmra.mxu3 %vm69_vm1, %v62_v57 }
  0x6b   :  { %747 = vmatmul.msk.f32.gmra.mxu0 %vm69_vm1, %v24_v46  ;;  %760 = vmatmul.msk.f32.gmra.mxu1 %vm69_vm1, %v37_v47 }
  0x6d   :  { %773 = vmatmul.msk.f32.gmra.mxu2 %vm69_vm1, %v50_v52  ;;  %786 = vmatmul.msk.f32.gmra.mxu3 %vm69_vm1, %v63_v59 }
  0x88   :  { %v1066_v55 = vpop.f32.mrf.mxu0  ;;  %v1068_v56 = vpop.f32.mrf.mxu1 }
  0x90   :  { %v1074_v58 = vpop.f32.mrf.mxu0  ;;  %v1079_v60 = vpop.f32.mrf.mxu1 }
  0x91   :  { %v1088_v0 = vpop.f32.mrf.mxu2  ;;  %v1106_v9 = vpop.f32.mrf.mxu3  ;;  %v403_v19 = vadd.f32 %v1074_v58, %v1066_v55 }
  0x98   :  { %v1082_v61 = vpop.f32.mrf.mxu0  ;;  %v1084_v62 = vpop.f32.mrf.mxu1 }
  0x99   :  { %v1094_v3 = vpop.f32.mrf.mxu2  ;;  %v1114_v13 = vpop.f32.mrf.mxu3  ;;  %v404_v21 = vadd.f32 %v403_v19, %v1082_v61 }
  0xa0   :  { %v1086_v63 = vpop.f32.mrf.mxu0  ;;  %v1090_v1 = vpop.f32.mrf.mxu1 }
  0xa1   :  { %v1100_v6 = vpop.f32.mrf.mxu2  ;;  %v1124_v18 = vpop.f32.mrf.mxu3  ;;  %v405_v22 = vadd.f32 %v404_v21, %v1086_v63 }
  0xa8   :  { %v1092_v2 = vpop.f32.mrf.mxu0  ;;  %v1098_v5 = vpop.f32.mrf.mxu1 }
  0xa9   :  { %v1110_v11 = vpop.f32.mrf.mxu2  ;;  %v406_v25 = vadd.f32 %v405_v22, %v1092_v2  ;;  %v1137_v26 = vpop.f32.mrf.mxu3 }
  0xaa   :  { %1655 = vst [vmem:[#allocation5_spill] sm:$0xff] %v1137_v26 }
  0xb0   :  { %v1096_v4 = vpop.f32.mrf.mxu0  ;;  %v1104_v8 = vpop.f32.mrf.mxu1 }
  0xb1   :  { %v1118_v15 = vpop.f32.mrf.mxu2  ;;  %v407_v27 = vadd.f32 %v406_v25, %v1096_v4  ;;  %v1150_v35 = vpop.f32.mrf.mxu3 }
  0xb2   :  { %1656 = vst [vmem:[#allocation6_spill] sm:$0xff] %v1150_v35 }
  0xb8   :  { %v1102_v7 = vpop.f32.mrf.mxu0  ;;  %v1112_v12 = vpop.f32.mrf.mxu1 }
  0xb9   :  { %v1128_v20 = vpop.f32.mrf.mxu2  ;;  %v408_v28 = vadd.f32 %v407_v27, %v1102_v7  ;;  %v1163_v44 = vpop.f32.mrf.mxu3 }
  0xba   :  { %1657 = vst [vmem:[#allocation7_spill] sm:$0xff] %v1163_v44 }
  0xc0   :  { %v1108_v10 = vpop.f32.mrf.mxu0  ;;  %v1120_v16 = vpop.f32.mrf.mxu1 }
  0xc1   :  { %v1141_v29 = vpop.f32.mrf.mxu2  ;;  %v409_v30 = vadd.f32 %v408_v28, %v1108_v10  ;;  %v1174_v52 = vpop.f32.mrf.mxu3 }
  0xc8   :  { %v1116_v14 = vpop.f32.mrf.mxu0  ;;  %v1134_v24 = vpop.f32.mrf.mxu1 }
  0xc9   :  { %v410_v32 = vadd.f32 %v409_v30, %v1116_v14  ;;  %v1156_v39 = vpop.f32.mrf.mxu2  ;;  %v1185_v25 = vpop.f32.mrf.mxu3 }
  0xd0   :  { %v1122_v17 = vpop.f32.mrf.mxu0  ;;  %v1147_v33 = vpop.f32.mrf.mxu1 }
  0xd1   :  { %v411_v34 = vadd.f32 %v410_v32, %v1122_v17  ;;  %v1167_v47 = vpop.f32.mrf.mxu2 }
  0xd8   :  { %v1132_v23 = vpop.f32.mrf.mxu0  ;;  %v1160_v42 = vpop.f32.mrf.mxu1 }
  0xd9   :  { %v412_v36 = vadd.f32 %v411_v34, %v1132_v23  ;;  %v1178_v57 = vpop.f32.mrf.mxu2 }
  0xe0   :  { %v1144_v31 = vpop.f32.mrf.mxu0  ;;  %v1171_v50 = vpop.f32.mrf.mxu1 }
  0xe1   :  { %v413_v37 = vadd.f32 %v412_v36, %v1144_v31  ;;  %v1189_v30 = vpop.f32.mrf.mxu2 }
  0xe8   :  { %v1154_v38 = vpop.f32.mrf.mxu0  ;;  %v1182_v21 = vpop.f32.mrf.mxu1 }
  0xe9   :  { %v414_v40 = vadd.f32 %v413_v37, %v1154_v38  ;;  %v1194_v37 = vpop.f32.mrf.mxu3 }
  0xeb   :  { %v415_v41 = vadd.f32 %v414_v40, %v1068_v56 }
  0xed   :  { %v416_v43 = vadd.f32 %v415_v41, %v1079_v60 }
  0xef   :  { %v417_v45 = vadd.f32 %v416_v43, %v1084_v62  ;;  %v1198_v43 = vpop.f32.mrf.mxu2 }
  0xf1   :  { %v418_v46 = vadd.f32 %v417_v45, %v1090_v1 }
  0xf3   :  { %v419_v48 = vadd.f32 %v418_v46, %v1098_v5 }
  0xf5   :  { %v420_v49 = vadd.f32 %v419_v48, %v1104_v8 }
  0xf7   :  { %v421_v51 = vadd.f32 %v420_v49, %v1112_v12  ;;  %v1203_v49 = vpop.f32.mrf.mxu3 }
  0xf9   :  { %v422_v53 = vadd.f32 %v421_v51, %v1120_v16 }
  0xfb   :  { %v423_v54 = vadd.f32 %v422_v53, %v1134_v24 }
  0xfd   :  { %v424_v59 = vadd.f32 %v423_v54, %v1147_v33  ;;  %v361_v54 = vpop.f32.mrf.mxu2 }
  0xff   :  { %v425_v19 = vadd.f32 %v424_v59, %v1160_v42 }
 0x101   :  { %v426_v22 = vadd.f32 %v425_v19, %v1171_v50 }
 0x103   :  { %v427_v27 = vadd.f32 %v426_v22, %v1182_v21 }
 0x105   :  { %v428_v28 = vadd.f32 %v427_v27, %v1088_v0  ;;  %v1209_v27 = vpop.f32.mrf.mxu3 }
 0x107   :  { %v429_v32 = vadd.f32 %v428_v28, %v1094_v3 }
 0x109   :  { %v430_v34 = vadd.f32 %v429_v32, %v1100_v6 }
 0x10b   :  { %v431_v36 = vadd.f32 %v430_v34, %v1110_v11 }
 0x10d   :  { %v432_v40 = vadd.f32 %v431_v36, %v1118_v15 }
 0x10f   :  { %v433_v41 = vadd.f32 %v432_v40, %v1128_v20 }
 0x111   :  { %v434_v45 = vadd.f32 %v433_v41, %v1141_v29  ;;  %v397_v41 = vpop.f32.mrf.mxu3 }
 0x113   :  { %v435_v46 = vadd.f32 %v434_v45, %v1156_v39 }
 0x115   :  { %v436_v48 = vadd.f32 %v435_v46, %v1167_v47 }
 0x117   :  { %v437_v51 = vadd.f32 %v436_v48, %v1178_v57 }
 0x119   :  { %v438_v53 = vadd.f32 %v437_v51, %v1189_v30 }
 0x11b   :  { %v439_v59 = vadd.f32 %v438_v53, %v1198_v43 }
 0x11d   :  { %v440_v19 = vadd.f32 %v439_v59, %v361_v54  ;;  %v400_v59 = vpop.f32.mrf.mxu3 }
 0x11f   :  { %v441_v22 = vadd.f32 %v440_v19, %v1106_v9 }
 0x121   :  { %v442_v28 = vadd.f32 %v441_v22, %v1114_v13 }
 0x123   :  { %v443_v32 = vadd.f32 %v442_v28, %v1124_v18 }
 0x125   :  { %v444_v34 = vadd.f32 %v443_v32, %v1137_v26 }
 0x127   :  { %v445_v36 = vadd.f32 %v444_v34, %v1150_v35 }
 0x129   :  { %v446_v40 = vadd.f32 %v445_v36, %v1163_v44 }
 0x12b   :  { %v447_v45 = vadd.f32 %v446_v40, %v1174_v52 }
 0x12d   :  { %v448_v46 = vadd.f32 %v447_v45, %v1185_v25 }
 0x12f   :  { %v449_v48 = vadd.f32 %v448_v46, %v1194_v37 }
 0x131   :  { %v450_v51 = vadd.f32 %v449_v48, %v1203_v49 }
 0x133   :  { %v451_v53 = vadd.f32 %v450_v51, %v1209_v27 }
 0x135   :  { %v452_v19 = vadd.f32 %v451_v53, %v397_v41 }
 0x137   :  { %v453_v22 = vadd.f32 %v452_v19, %v400_v59 }
 0x139   :  { %v454_v28 = vrot.slane %v453_v22, 4 }
 0x13b   :  { %v455_v32 = vadd.f32 %v454_v28, %v453_v22 }
 0x13d   :  { %v456_v26 = vrot.slane %v455_v32, 2 }
 0x13f   :  { %v457_v34 = vadd.f32 %v456_v26, %v455_v32 }
 0x141   :  { %v458_v35 = vrot.slane %v457_v34, 1 }
 0x143   :  { %v459_v36 = vadd.f32 %v458_v35, %v457_v34 }
 0x145   :  { %v1221_v44 = vmul.f32 0.0025510204, %v459_v36 }
 0x147   :  { %1658 = vst [vmem:[#allocation8_spill] sm:$0xff] %v1221_v44  ;;  %v1224_v40 = vsub.f32 %v361_v54, %v1221_v44  ;;  %v1228_v45 = vsub.f32 %v1066_v55, %v1221_v44  ;;  %v1232_v46 = vsub.f32 %v1074_v58, %v1221_v44  ;;  %v1236_v48 = vsub.f32 %v1082_v61, %v1221_v44 }
 0x148   :  { %v1239_v26 = vsub.f32 %v397_v41, %v1221_v44  ;;  %v1242_v35 = vsub.f32 %v400_v59, %v1221_v44  ;;  %v1246_v54 = vsub.f32 %v1086_v63, %v1221_v44  ;;  %v1250_v55 = vsub.f32 %v1092_v2, %v1221_v44 }
 0x149   :  { %1659 = vst [vmem:[#allocation9_spill] sm:$0xff] %v1224_v40  ;;  %v1254_v58 = vsub.f32 %v1096_v4, %v1221_v44  ;;  %v1258_v61 = vsub.f32 %v1102_v7, %v1221_v44  ;;  %v1262_v41 = vsub.f32 %v1108_v10, %v1221_v44  ;;  %v1266_v63 = vsub.f32 %v1116_v14, %v1221_v44 }
 0x14a   :  { %1660 = vst [vmem:[#allocation10_spill] sm:$0xff] %v1239_v26  ;;  %v1270_v2 = vsub.f32 %v1122_v17, %v1221_v44  ;;  %v1274_v4 = vsub.f32 %v1132_v23, %v1221_v44  ;;  %v1278_v7 = vsub.f32 %v1144_v31, %v1221_v44  ;;  %v1282_v10 = vsub.f32 %v1154_v38, %v1221_v44 }
 0x14b   :  { %1661 = vst [vmem:[#allocation11_spill] sm:$0xff] %v1242_v35  ;;  %v1286_v14 = vsub.f32 %v1068_v56, %v1221_v44  ;;  %v1290_v17 = vsub.f32 %v1079_v60, %v1221_v44  ;;  %v1294_v23 = vsub.f32 %v1084_v62, %v1221_v44  ;;  %v1298_v31 = vsub.f32 %v1090_v1, %v1221_v44 }
 0x14c   :  { %v1302_v38 = vsub.f32 %v1098_v5, %v1221_v44  ;;  %v1306_v56 = vsub.f32 %v1104_v8, %v1221_v44  ;;  %v1310_v60 = vsub.f32 %v1112_v12, %v1221_v44  ;;  %v1314_v62 = vsub.f32 %v1120_v16, %v1221_v44 }
 0x14d   :  { %v1318_v1 = vsub.f32 %v1134_v24, %v1221_v44  ;;  %v1322_v5 = vsub.f32 %v1147_v33, %v1221_v44  ;;  %v1326_v8 = vsub.f32 %v1160_v42, %v1221_v44  ;;  %v1330_v12 = vsub.f32 %v1171_v50, %v1221_v44 }
 0x14e   :  { %v1334_v16 = vsub.f32 %v1182_v21, %v1221_v44  ;;  %v1338_v24 = vsub.f32 %v1088_v0, %v1221_v44  ;;  %v1342_v33 = vsub.f32 %v1094_v3, %v1221_v44  ;;  %v1346_v42 = vsub.f32 %v1100_v6, %v1221_v44 }
 0x14f   :  { %v1350_v50 = vsub.f32 %v1110_v11, %v1221_v44  ;;  %v1354_v21 = vsub.f32 %v1118_v15, %v1221_v44  ;;  %v1358_v0 = vsub.f32 %v1128_v20, %v1221_v44  ;;  %v1362_v3 = vsub.f32 %v1141_v29, %v1221_v44 }
 0x150   :  { %1662 = vst [vmem:[#allocation12_spill] sm:$0xff] %v1334_v16  ;;  %v1366_v6 = vsub.f32 %v1156_v39, %v1221_v44  ;;  %v1370_v11 = vsub.f32 %v1167_v47, %v1221_v44  ;;  %v1374_v15 = vsub.f32 %v1178_v57, %v1221_v44  ;;  %v1378_v20 = vsub.f32 %v1189_v30, %v1221_v44 }
 0x151   :  { %1663 = vst [vmem:[#allocation13_spill] sm:$0xff] %v1354_v21  ;;  %v1382_v29 = vsub.f32 %v1198_v43, %v1221_v44  ;;  %v1386_v39 = vsub.f32 %v1106_v9, %v1221_v44  ;;  %v1390_v47 = vsub.f32 %v1114_v13, %v1221_v44  ;;  %v1394_v57 = vsub.f32 %v1124_v18, %v1221_v44  ;;  %v1671_v43 = vld [vmem:[#allocation5_spill] sm:$0xff]  ;;  %v1673_v9 = vld [vmem:[#allocation6_spill] sm:$0xff]  ;;  %v1675_v13 = vld [vmem:[#allocation7_spill] sm:$0xff] }
 0x152   :  { %1664 = vst [vmem:[#allocation14_spill] sm:$0xff] %v1358_v0  ;;  %v513_v30 = vmul.f32 %v1228_v45, %v1228_v45  ;;  %v514_v51 = vmul.f32 %v1232_v46, %v1232_v46  ;;  %v1402_v53 = vsub.f32 %v1671_v43, %v1221_v44  ;;  %v1406_v59 = vsub.f32 %v1673_v9, %v1221_v44 }
 0x153   :  { %1665 = vst [vmem:[#allocation15_spill] sm:$0xff] %v1366_v6  ;;  %v1410_v19 = vsub.f32 %v1675_v13, %v1221_v44  ;;  %v1414_v18 = vsub.f32 %v1174_v52, %v1221_v44  ;;  %v1418_v22 = vsub.f32 %v1185_v25, %v1221_v44  ;;  %v1422_v28 = vsub.f32 %v1194_v37, %v1221_v44 }
 0x154   :  { %1666 = vst [vmem:[#allocation16_spill] sm:$0xff] %v1374_v15  ;;  %v1426_v32 = vsub.f32 %v1203_v49, %v1221_v44  ;;  %v1430_v34 = vsub.f32 %v1209_v27, %v1221_v44  ;;  %v515_v52 = vmul.f32 %v1236_v48, %v1236_v48  ;;  %v516_v36 = vmul.f32 %v1246_v54, %v1246_v54 }
 0x155   :  { %1667 = vst [vmem:[#allocation17_spill] sm:$0xff] %v1382_v29  ;;  %v517_v25 = vmul.f32 %v1250_v55, %v1250_v55  ;;  %v518_v37 = vmul.f32 %v1254_v58, %v1254_v58  ;;  %v519_v49 = vmul.f32 %v1258_v61, %v1258_v61  ;;  %v565_v43 = vadd.f32 %v514_v51, %v513_v30 }
 0x156   :  { %1668 = vst [vmem:[#allocation18_spill] sm:$0xff] %v1386_v39  ;;  %v650_v27 = vmax.f32 %v1282_v10, %v1334_v16  ;;  %v663_v9 = vmax.f32 %v1224_v40, %v1242_v35  ;;  %v638_v13 = vmax.f32 %v1228_v45, %v1286_v14  ;;  %v639_v44 = vmax.f32 %v1232_v46, %v1290_v17 }
 0x157   :  { %1669 = vst [vmem:[#allocation19_spill] sm:$0xff] %v1390_v47  ;;  %v640_v29 = vmax.f32 %v1236_v48, %v1294_v23  ;;  %v641_v26 = vmax.f32 %v1246_v54, %v1298_v31  ;;  %v520_v30 = vmul.f32 %v1262_v41, %v1262_v41  ;;  %v566_v51 = vadd.f32 %v565_v43, %v515_v52 }
 0x158   :  { %1670 = vst [vmem:[#allocation20_spill] sm:$0xff] %v1394_v57  ;;  %v1456_v16 = vmax.f32 %v650_v27, %v663_v9  ;;  %v642_v35 = vmax.f32 %v1250_v55, %v1302_v38  ;;  %v643_v45 = vmax.f32 %v1254_v58, %v1306_v56  ;;  %v644_v46 = vmax.f32 %v1258_v61, %v1310_v60 }
 0x159   :  { %1672 = vst [vmem:[#allocation5_spill] sm:$0xff] %v1402_v53  ;;  %v645_v48 = vmax.f32 %v1262_v41, %v1314_v62  ;;  %v646_v54 = vmax.f32 %v1266_v63, %v1318_v1  ;;  %v567_v40 = vadd.f32 %v566_v51, %v516_v36  ;;  %v647_v52 = vmax.f32 %v1270_v2, %v1322_v5 }
 0x15a   :  { %1674 = vst [vmem:[#allocation6_spill] sm:$0xff] %v1406_v59  ;;  %v648_v43 = vmax.f32 %v1274_v4, %v1326_v8  ;;  %v649_v55 = vmax.f32 %v1278_v7, %v1330_v12  ;;  %v651_v58 = vmax.f32 %v1338_v24, %v1386_v39  ;;  %v652_v61 = vmax.f32 %v1342_v33, %v1390_v47 }
 0x15b   :  { %1676 = vst [vmem:[#allocation7_spill] sm:$0xff] %v1410_v19  ;;  %v653_v41 = vmax.f32 %v1346_v42, %v1394_v57  ;;  %v654_v36 = vmax.f32 %v1350_v50, %v1402_v53  ;;  %v568_v27 = vadd.f32 %v567_v40, %v517_v25  ;;  %v655_v9 = vmax.f32 %v1354_v21, %v1406_v59  ;;  %v1683_v59 = vld [vmem:[#allocation10_spill] sm:$0xff] }
 0x15c   :  { %1677 = vst [vmem:[#allocation21_spill] sm:$0xff] %v1414_v18  ;;  %v656_v51 = vmax.f32 %v1358_v0, %v1410_v19  ;;  %v658_v39 = vmax.f32 %v1366_v6, %v1418_v22  ;;  %v659_v47 = vmax.f32 %v1370_v11, %v1422_v28  ;;  %v660_v57 = vmax.f32 %v1374_v15, %v1426_v32  ;;  %v1684_v53 = vld [vmem:[#allocation17_spill] sm:$0xff] }
 0x15d   :  { %1678 = vst [vmem:[#allocation22_spill] sm:$0xff] %v1418_v22  ;;  %v661_v40 = vmax.f32 %v1378_v20, %v1430_v34  ;;  %v569_v25 = vadd.f32 %v568_v27, %v518_v37  ;;  %v662_v21 = vmax.f32 %v1684_v53, %v1683_v59  ;;  %v1498_v19 = vmax.f32 %v638_v13, %v651_v58 }
 0x15e   :  { %1679 = vst [vmem:[#allocation23_spill] sm:$0xff] %v1422_v28  ;;  %v1500_v0 = vmax.f32 %v639_v44, %v652_v61  ;;  %v1504_v22 = vmax.f32 %v641_v26, %v654_v36  ;;  %v1506_v6 = vmax.f32 %v642_v35, %v655_v9  ;;  %v1508_v28 = vmax.f32 %v643_v45, %v656_v51  ;;  %v1685_v9 = vld [vmem:[#allocation12_spill] sm:$0xff] }
 0x15f   :  { %1680 = vst [vmem:[#allocation24_spill] sm:$0xff] %v1426_v32  ;;  %v570_v32 = vadd.f32 %v569_v25, %v519_v49  ;;  %v1514_v37 = vmax.f32 %v646_v54, %v659_v47  ;;  %v1516_v27 = vmax.f32 %v647_v52, %v660_v57  ;;  %v1518_v13 = vmax.f32 %v648_v43, %v661_v40 }
 0x160   :  { %1681 = vst [vmem:[#allocation25_spill] sm:$0xff] %v1430_v34  ;;  %v1512_v34 = vmax.f32 %v645_v48, %v658_v39  ;;  %v1520_v44 = vmax.f32 %v649_v55, %v662_v21  ;;  %v521_v26 = vmul.f32 %v1266_v63, %v1266_v63  ;;  %v524_v47 = vmul.f32 %v1278_v7, %v1278_v7 }
 0x161   :  { %1682 = vst [vmem:[#allocation26_spill] sm:$0xff] %v1456_v16  ;;  %v657_v16 = vmax.f32 %v1362_v3, %v1414_v18  ;;  %v1502_v18 = vmax.f32 %v640_v29, %v653_v41  ;;  %v571_v35 = vadd.f32 %v570_v32, %v520_v30  ;;  %v522_v29 = vmul.f32 %v1270_v2, %v1270_v2 }
 0x162   :  { %v525_v21 = vmul.f32 %v1282_v10, %v1282_v10  ;;  %v526_v63 = vmul.f32 %v1286_v14, %v1286_v14  ;;  %v527_v2 = vmul.f32 %v1290_v17, %v1290_v17  ;;  %v529_v7 = vmul.f32 %v1298_v31, %v1298_v31 }
 0x163   :  { %v1510_v15 = vmax.f32 %v644_v46, %v657_v16  ;;  %v572_v49 = vadd.f32 %v571_v35, %v521_v26  ;;  %v523_v16 = vmul.f32 %v1274_v4, %v1274_v4  ;;  %v528_v4 = vmul.f32 %v1294_v23, %v1294_v23 }
 0x164   :  { %v530_v10 = vmul.f32 %v1302_v38, %v1302_v38  ;;  %v531_v14 = vmul.f32 %v1306_v56, %v1306_v56  ;;  %v532_v17 = vmul.f32 %v1310_v60, %v1310_v60  ;;  %v533_v23 = vmul.f32 %v1314_v62, %v1314_v62 }
 0x165   :  { %v573_v39 = vadd.f32 %v572_v49, %v522_v29  ;;  %v534_v31 = vmul.f32 %v1318_v1, %v1318_v1  ;;  %v535_v38 = vmul.f32 %v1322_v5, %v1322_v5  ;;  %v536_v56 = vmul.f32 %v1326_v8, %v1326_v8  ;;  %v1686_v29 = vld [vmem:[#allocation13_spill] sm:$0xff] }
 0x166   :  { %v537_v60 = vmul.f32 %v1330_v12, %v1330_v12  ;;  %v538_v62 = vmul.f32 %v1685_v9, %v1685_v9  ;;  %v539_v1 = vmul.f32 %v1338_v24, %v1338_v24  ;;  %v540_v5 = vmul.f32 %v1342_v33, %v1342_v33 }
 0x167   :  { %v574_v57 = vadd.f32 %v573_v39, %v523_v16  ;;  %v541_v8 = vmul.f32 %v1346_v42, %v1346_v42  ;;  %v542_v12 = vmul.f32 %v1350_v50, %v1350_v50  ;;  %v543_v49 = vmul.f32 %v1686_v29, %v1686_v29  ;;  %v1687_v39 = vld [vmem:[#allocation14_spill] sm:$0xff] }
 0x168   :  { %v544_v24 = vmul.f32 %v1687_v39, %v1687_v39  ;;  %v545_v33 = vmul.f32 %v1362_v3, %v1362_v3  ;;  %v547_v50 = vmul.f32 %v1370_v11, %v1370_v11  ;;  %v550_v3 = vmul.f32 %v1684_v53, %v1684_v53 }
 0x169   :  { %v575_v45 = vadd.f32 %v574_v57, %v524_v47 }
 0x16b   :  { %v576_v32 = vadd.f32 %v575_v45, %v525_v21  ;;  %v1688_v21 = vld [vmem:[#allocation15_spill] sm:$0xff] }
 0x16c   :  { %v546_v42 = vmul.f32 %v1688_v21, %v1688_v21 }
 0x16d   :  { %v577_v30 = vadd.f32 %v576_v32, %v526_v63  ;;  %v1689_v32 = vld [vmem:[#allocation16_spill] sm:$0xff] }
 0x16f   :  { %v578_v46 = vadd.f32 %v577_v30, %v527_v2  ;;  %v548_v2 = vmul.f32 %v1689_v32, %v1689_v32 }
 0x171   :  { %v579_v48 = vadd.f32 %v578_v46, %v528_v4  ;;  %v549_v4 = vmul.f32 %v1378_v20, %v1378_v20 }
 0x173   :  { %v580_v54 = vadd.f32 %v579_v48, %v529_v7  ;;  %v1690_v48 = vld [vmem:[#allocation9_spill] sm:$0xff] }
 0x175   :  { %v581_v52 = vadd.f32 %v580_v54, %v530_v10  ;;  %v551_v10 = vmul.f32 %v1690_v48, %v1690_v48 }
 0x177   :  { %v582_v43 = vadd.f32 %v581_v52, %v531_v14  ;;  %v1691_v14 = vld [vmem:[#allocation18_spill] sm:$0xff] }
 0x178   :  { %v552_v11 = vmul.f32 %v1691_v14, %v1691_v14 }
 0x179   :  { %v583_v55 = vadd.f32 %v582_v43, %v532_v17  ;;  %v1692_v17 = vld [vmem:[#allocation19_spill] sm:$0xff] }
 0x17a   :  { %v553_v43 = vmul.f32 %v1692_v17, %v1692_v17 }
 0x17b   :  { %v584_v58 = vadd.f32 %v583_v55, %v533_v23  ;;  %v1693_v55 = vld [vmem:[#allocation20_spill] sm:$0xff] }
 0x17c   :  { %v554_v20 = vmul.f32 %v1693_v55, %v1693_v55 }
 0x17d   :  { %v585_v61 = vadd.f32 %v584_v58, %v534_v31  ;;  %v1694_v58 = vld [vmem:[#allocation5_spill] sm:$0xff] }
 0x17e   :  { %v555_v53 = vmul.f32 %v1694_v58, %v1694_v58 }
 0x17f   :  { %v586_v41 = vadd.f32 %v585_v61, %v535_v38  ;;  %v1695_v61 = vld [vmem:[#allocation6_spill] sm:$0xff] }
 0x181   :  { %v587_v36 = vadd.f32 %v586_v41, %v536_v56  ;;  %v556_v56 = vmul.f32 %v1695_v61, %v1695_v61 }
 0x183   :  { %v588_v51 = vadd.f32 %v587_v36, %v537_v60  ;;  %v1696_v60 = vld [vmem:[#allocation7_spill] sm:$0xff] }
 0x184   :  { %v557_v36 = vmul.f32 %v1696_v60, %v1696_v60 }
 0x185   :  { %v589_v40 = vadd.f32 %v588_v51, %v538_v62  ;;  %v1697_v62 = vld [vmem:[#allocation21_spill] sm:$0xff] }
 0x186   :  { %v558_v51 = vmul.f32 %v1697_v62, %v1697_v62 }
 0x187   :  { %v590_v25 = vadd.f32 %v589_v40, %v539_v1  ;;  %v1698_v40 = vld [vmem:[#allocation22_spill] sm:$0xff] }
 0x189   :  { %v591_v26 = vadd.f32 %v590_v25, %v540_v5  ;;  %v559_v5 = vmul.f32 %v1698_v40, %v1698_v40 }
 0x18b   :  { %v592_v35 = vadd.f32 %v591_v26, %v541_v8  ;;  %v1699_v8 = vld [vmem:[#allocation23_spill] sm:$0xff] }
 0x18c   :  { %v560_v26 = vmul.f32 %v1699_v8, %v1699_v8 }
 0x18d   :  { %v593_v16 = vadd.f32 %v592_v35, %v542_v12  ;;  %v1700_v35 = vld [vmem:[#allocation24_spill] sm:$0xff] }
 0x18e   :  { %v561_v29 = vmul.f32 %v1700_v35, %v1700_v35 }
 0x18f   :  { %v594_v47 = vadd.f32 %v593_v16, %v543_v49  ;;  %v1701_v16 = vld [vmem:[#allocation25_spill] sm:$0xff] }
 0x190   :  { %v562_v39 = vmul.f32 %v1701_v16, %v1701_v16 }
 0x191   :  { %v595_v57 = vadd.f32 %v594_v47, %v544_v24  ;;  %v563_v47 = vmul.f32 %v1683_v59, %v1683_v59 }
 0x193   :  { %v596_v45 = vadd.f32 %v595_v57, %v545_v33  ;;  %v1702_v57 = vld [vmem:[#allocation11_spill] sm:$0xff] }
 0x194   :  { %v564_v21 = vmul.f32 %v1702_v57, %v1702_v57 }
 0x195   :  { %v597_v63 = vadd.f32 %v596_v45, %v546_v42 }
 0x197   :  { %v598_v30 = vadd.f32 %v597_v63, %v547_v50 }
 0x199   :  { %v599_v46 = vadd.f32 %v598_v30, %v548_v2  ;;  %v1703_v30 = vld [vmem:[#allocation8_spill] sm:$0xff] }
 0x19b   :  { %v600_v7 = vadd.f32 %v599_v46, %v549_v4  ;;  %v622_v4 = vmul.f32 %v1703_v30, %v1703_v30 }
 0x19d   :  { %v601_v54 = vadd.f32 %v600_v7, %v550_v3  ;;  %v623_v7 = vmul.f32 24.0, %v622_v4 }
 0x19f   :  { %v602_v52 = vadd.f32 %v601_v54, %v551_v10 }
 0x1a1   :  { %v603_v23 = vadd.f32 %v602_v52, %v552_v11 }
 0x1a3   :  { %v604_v31 = vadd.f32 %v603_v23, %v553_v43 }
 0x1a5   :  { %v605_v38 = vadd.f32 %v604_v31, %v554_v20  ;;  %v1704_v20 = vld [vmem:[#allocation26_spill] sm:$0xff] }
 0x1a7   :  { %v606_v41 = vadd.f32 %v605_v38, %v555_v53 }
 0x1a9   :  { %v607_v9 = vadd.f32 %v606_v41, %v556_v56 }
 0x1ab   :  { %v608_v1 = vadd.f32 %v607_v9, %v557_v36 }
 0x1ad   :  { %v609_v25 = vadd.f32 %v608_v1, %v558_v51 }
 0x1af   :  { %v610_v12 = vadd.f32 %v609_v25, %v559_v5 }
 0x1b1   :  { %v611_v49 = vadd.f32 %v610_v12, %v560_v26 }
 0x1b3   :  { %v612_v24 = vadd.f32 %v611_v49, %v561_v29 }
 0x1b5   :  { %v613_v33 = vadd.f32 %v612_v24, %v562_v39 }
 0x1b7   :  { %v614_v42 = vadd.f32 %v613_v33, %v563_v47 }
 0x1b9   :  { %v615_v45 = vadd.f32 %v614_v42, %v564_v21 }
 0x1bb   :  { %v616_v50 = vrot.slane %v615_v45, 4 }
 0x1bd   :  { %v617_v63 = vadd.f32 %v616_v50, %v615_v45 }
 0x1bf   :  { %v618_v32 = vrot.slane %v617_v63, 2 }
 0x1c1   :  { %v619_v2 = vadd.f32 %v618_v32, %v617_v63 }
 0x1c3   :  { %v620_v46 = vrot.slane %v619_v2, 1 }
 0x1c5   :  { %v621_v3 = vadd.f32 %v620_v46, %v619_v2 }
 0x1c7   :  { %v624_v48 = vsub.f32 %v621_v3, %v623_v7 }
 0x1c9   :  { %v625_v10 = vmul.f32 0.0025510204, %v624_v48 }
 0x1cb   :  { %v626_v54 = vadd.f32 1e-05, %v625_v10 }
 0x1cd   :  { %805 = vrsqrt.f32 %v626_v54  ;;  %vm633_vm3 = vweird.f32 %v626_v54 }
 0x1d3   :  { %v806_v59 = vpop.eup %805 }
 0x1d4   :  { %v628_v14 = vmul.f32 %v806_v59, %v626_v54  ;;  %vm634_vm2 = vweird.f32 %v806_v59 }
 0x1d5   :  { %vm635_vm4 = vmor %vm633_vm3, %vm634_vm2 }
 0x1d6   :  { %v629_v11 = vmul.f32 %v806_v59, %v628_v14 }
 0x1d8   :  { %v630_v52 = vmul.f32 0.5, %v629_v11 }
 0x1da   :  { %v631_v17 = vsub.f32 1.5, %v630_v52 }
 0x1dc   :  { %v632_v43 = vmul.f32 %v806_v59, %v631_v17 }
 0x1de   :  { %v636_v23 = vsel %vm635_vm4, %v806_v59, %v632_v43 }
 0x1df   :  { %v637_v55 = vmul.f32 2.0, %v636_v23 }
 0x1e1   :  { %v689_v31 = vmul.f32 %v1704_v20, %v637_v55  ;;  %v677_v58 = vmul.f32 %v1498_v19, %v637_v55  ;;  %v678_v53 = vmul.f32 %v1500_v0, %v637_v55  ;;  %v679_v38 = vmul.f32 %v1502_v18, %v637_v55 }
 0x1e2   :  { %v680_v61 = vmul.f32 %v1504_v22, %v637_v55  ;;  %v681_v56 = vmul.f32 %v1506_v6, %v637_v55  ;;  %v682_v41 = vmul.f32 %v1508_v28, %v637_v55  ;;  %v683_v60 = vmul.f32 %v1510_v15, %v637_v55 }
 0x1e3   :  { %v702_v36 = vmax.f32 %v689_v31, 0.0  ;;  %v684_v9 = vmul.f32 %v1512_v34, %v637_v55  ;;  %v685_v62 = vmul.f32 %v1514_v37, %v637_v55  ;;  %v686_v51 = vmul.f32 %v1516_v27, %v637_v55 }
 0x1e4   :  { %v687_v19 = vmul.f32 %v1518_v13, %v637_v55  ;;  %v688_v0 = vmul.f32 %v1520_v44, %v637_v55  ;;  %v690_v18 = vmax.f32 %v677_v58, 0.0  ;;  %v691_v1 = vmax.f32 %v678_v53, 0.0 }
 0x1e5   :  { %715 = vst [vmem:[#allocation2 + $0x60] sm:$0xff] %v702_v36  ;;  %v692_v22 = vmax.f32 %v679_v38, 0.0  ;;  %v693_v6 = vmax.f32 %v680_v61, 0.0  ;;  %v694_v40 = vmax.f32 %v681_v56, 0.0  ;;  %v695_v28 = vmax.f32 %v682_v41, 0.0 }
 0x1e6   :  { %703 = vst [vmem:[#allocation2] sm:$0xff] %v690_v18  ;;  %v696_v15 = vmax.f32 %v683_v60, 0.0  ;;  %v697_v34 = vmax.f32 %v684_v9, 0.0  ;;  %v698_v37 = vmax.f32 %v685_v62, 0.0  ;;  %v699_v27 = vmax.f32 %v686_v51, 0.0 }
 0x1e7   :  { %704 = vst [vmem:[#allocation2 + $0x8] sm:$0xff] %v691_v1  ;;  %v700_v13 = vmax.f32 %v687_v19, 0.0  ;;  %v701_v44 = vmax.f32 %v688_v0, 0.0 }
 0x1e8   :  { %705 = vst [vmem:[#allocation2 + $0x10] sm:$0xff] %v692_v22 }
 0x1e9   :  { %706 = vst [vmem:[#allocation2 + $0x18] sm:$0xff] %v693_v6 }
 0x1ea   :  { %707 = vst [vmem:[#allocation2 + $0x20] sm:$0xff] %v694_v40 }
 0x1eb   :  { %708 = vst [vmem:[#allocation2 + $0x28] sm:$0xff] %v695_v28 }
 0x1ec   :  { %709 = vst [vmem:[#allocation2 + $0x30] sm:$0xff] %v696_v15 }
 0x1ed   :  { %710 = vst [vmem:[#allocation2 + $0x38] sm:$0xff] %v697_v34 }
 0x1ee   :  { %711 = vst [vmem:[#allocation2 + $0x40] sm:$0xff] %v698_v37 }
 0x1ef   :  { %712 = vst [vmem:[#allocation2 + $0x48] sm:$0xff] %v699_v27 }
 0x1f0   :  { %713 = vst [vmem:[#allocation2 + $0x50] sm:$0xff] %v700_v13 }
 0x1f1   :  { %714 = vst [vmem:[#allocation2 + $0x58] sm:$0xff] %v701_v44 }
 0x1f2   :  { %728 = dma.vmem_to_hbm [thread:$0]  %s721_s7, 1664, %s723_s10, [#allocation3], %s834_s11, %s834_s11, %s835_s12  }
 0x1f3   :  { %831 = dma.done.wait [#allocation3], 1664  }
 0x1f4   :  { %832 = vsyncadd [#allocation3], 4294965632 }
 0x1f5   :  { %733 = vsyncpa [#allocation3], 1 }

</bundles_post_ra>
